<compile_context>
chip_gen: v7x
topology: tpu7x:2x2x1
jax: 0.10.0
libtpu: 0.0.40
codegen_flags: <defaults>
</compile_context>

<pallas_src>
import functools

import jax
import jax.numpy as jnp
from jax.experimental import pallas as pl
from jax.experimental.pallas import tpu as pltpu


def _round_up(n, m):
    return ((n + m - 1) // m) * m


def _fused_mlp_kernel(x_ref, w_ref, b_ref, o_ref, *, n_layers):
    """One batch tile through the whole MLP, entirely in VMEM.

    x_ref: (TM, P)  w_ref: (L, P, P)  b_ref: (L, 1, P)  o_ref: (TM, P)
    """
    act = x_ref[...]
    for l in range(n_layers):                       # static unroll (L is small)
        y = jnp.dot(act, w_ref[l], preferred_element_type=jnp.float32)  # MXU
        y = y + b_ref[l]                            # (1, P) broadcast over rows
        act = jnp.maximum(y, 0.0)                   # ReLU epilogue in f32 (VPU)
    o_ref[...] = act.astype(o_ref.dtype)


def fused_mlp(x, w_stack, b_stack, *, tm):
    """x: (Mp, P), w_stack: (L, P, P), b_stack: (L, 1, P)  ->  (Mp, P)."""
    Mp, P = x.shape
    L = w_stack.shape[0]
    grid = (pl.cdiv(Mp, tm),)
    return pl.pallas_call(
        functools.partial(_fused_mlp_kernel, n_layers=L),
        out_shape=jax.ShapeDtypeStruct((Mp, P), x.dtype),
        grid=grid,
        in_specs=[
            # activation tile varies with the grid index
            pl.BlockSpec((tm, P), lambda i: (i, 0)),
            # weights/biases: constant block -> loaded once, VMEM-resident
            pl.BlockSpec((L, P, P), lambda i: (0, 0, 0)),
            pl.BlockSpec((L, 1, P), lambda i: (0, 0, 0)),
        ],
        out_specs=pl.BlockSpec((tm, P), lambda i: (i, 0)),
        compiler_params=pltpu.CompilerParams(
            # batch tiles are independent -> shard across TCs on v7x megacore
            dimension_semantics=("parallel",),
        ),
    )(x, w_stack, b_stack)


@jax.jit
def mlp_forward(x, params_flat):
    """Forward pass of the PyTorch MLP: ReLU after every Linear (incl. the last)."""
    batch, in_features = x.shape
    n_layers = len(params_flat)
    out_features = params_flat[-1][0].shape[1]

    # Common lane-dense padded width for every layer.
    max_dim = in_features
    for w, _ in params_flat:
        max_dim = max(max_dim, w.shape[0], w.shape[1])
    P = _round_up(max_dim, 128)

    # Batch tile: up to 128 rows per grid step, padded to a sublane multiple.
    tm = min(128, _round_up(batch, 8))
    Mp = _round_up(batch, tm)

    # Zero-pad input to (Mp, P).
    x_pad = jnp.zeros((Mp, P), x.dtype).at[:batch, :in_features].set(x)

    # Stack zero-padded weights/biases: (L, P, P) and (L, 1, P).
    w_stack = jnp.zeros((n_layers, P, P), x.dtype)
    b_stack = jnp.zeros((n_layers, 1, P), x.dtype)
    for l, (w, b) in enumerate(params_flat):
        fi, fo = w.shape
        w_stack = w_stack.at[l, :fi, :fo].set(w)
        b_stack = b_stack.at[l, :1, :fo].set(b)

    y_pad = fused_mlp(x_pad, w_stack, b_stack, tm=tm)
    return y_pad[:batch, :out_features]


def init_mlp_params(key, in_features, n_layers, intermediate_size, out_features,
                    dtype=jnp.float32):
    """Params matching nn.Linear shapes; weights stored transposed as (in, out)."""
    params = []
    for i in range(n_layers):
        if i == 0:
            fan_in, fan_out = in_features, intermediate_size
        elif i == n_layers - 1:
            fan_in, fan_out = intermediate_size, out_features
        else:
            fan_in, fan_out = intermediate_size, intermediate_size
        key, wk, bk = jax.random.split(key, 3)
        bound = 1.0 / (fan_in ** 0.5)        # PyTorch default Linear init range
        w = jax.random.uniform(wk, (fan_in, fan_out), dtype, -bound, bound)
        b = jax.random.uniform(bk, (1, fan_out), dtype, -bound, bound)
        params.append((w, b))
    return params


def mlp_reference(x, params):
    y = x
    for w, b in params:
        y = jnp.maximum(y @ w + b, 0.0)
    return y


if __name__ == "__main__":
    in_features = 32
    n_layers = 3
    intermediate_size = 64
    out_features = 16
    batch = 8

    key = jax.random.PRNGKey(0)
    key, xk = jax.random.split(key)
    x = jax.random.normal(xk, (batch, in_features), jnp.float32)
    params = init_mlp_params(key, in_features, n_layers, intermediate_size, out_features)

    out = mlp_forward(x, tuple(params))
    out = jax.block_until_ready(out)

    ref = mlp_reference(x, params)
    assert out.shape == (batch, out_features)
    assert jnp.allclose(out, ref, atol=1e-5, rtol=1e-5)

    print("KERNEL_OK")
</pallas_src>

<mosaic_0001>
module attributes {stable_mosaic.version = 11 : i64} {
  func.func @_fused_mlp_kernel(%arg0: i32, %arg1: memref<8x128xf32, #tpu.memory_space<vmem>>, %arg2: memref<3x128x128xf32, #tpu.memory_space<vmem>>, %arg3: memref<3x1x128xf32, #tpu.memory_space<vmem>>, %arg4: memref<8x128xf32, #tpu.memory_space<vmem>>) attributes {dimension_semantics = [#tpu.dimension_semantics<parallel>], iteration_bounds = array<i64: 1>, scalar_prefetch = 0 : i64, scratch_operands = 0 : i64, tpu.core_type = #tpu.core_type<tc>, window_params = [{transform_indices = @transform_0, window_bounds = array<i64: 8, 128>}, {pipeline_mode = #tpu.pipeline_mode<synchronous>, transform_indices = @transform_1, window_bounds = array<i64: 3, 128, 128>}, {pipeline_mode = #tpu.pipeline_mode<synchronous>, transform_indices = @transform_2, window_bounds = array<i64: 3, 1, 128>}, {transform_indices = @transform_3, window_bounds = array<i64: 8, 128>}]} {
    %c0 = arith.constant 0 : index
    %c0_0 = arith.constant 0 : index
    %0 = vector.load %arg1[%c0, %c0_0] : memref<8x128xf32, #tpu.memory_space<vmem>>, vector<8x128xf32>
    %c0_1 = arith.constant 0 : index
    %c0_2 = arith.constant 0 : index
    %c0_3 = arith.constant 0 : index
    %1 = vector.load %arg2[%c0_1, %c0_2, %c0_3] : memref<3x128x128xf32, #tpu.memory_space<vmem>>, vector<1x128x128xf32>
    %2 = vector.shape_cast %1 : vector<1x128x128xf32> to vector<128x128xf32>
    %cst = arith.constant dense<0.000000e+00> : vector<8x128xf32>
    %3 = tpu.matmul %0, %2, %cst {dimension_numbers = #tpu.dot_dimension_numbers<[1], [0], [0], [1], [0, 0, 1, 1], [], []>} : vector<8x128xf32>, vector<128x128xf32>, vector<8x128xf32> -> vector<8x128xf32>
    %c0_4 = arith.constant 0 : index
    %c0_5 = arith.constant 0 : index
    %c0_6 = arith.constant 0 : index
    %4 = vector.load %arg3[%c0_4, %c0_5, %c0_6] : memref<3x1x128xf32, #tpu.memory_space<vmem>>, vector<1x1x128xf32>
    %5 = vector.shape_cast %4 : vector<1x1x128xf32> to vector<1x128xf32>
    %6 = vector.broadcast %5 : vector<1x128xf32> to vector<8x128xf32>
    %7 = arith.addf %3, %6 : vector<8x128xf32>
    %cst_7 = arith.constant 0.000000e+00 : f32
    %8 = vector.broadcast %cst_7 : f32 to vector<8x128xf32>
    %9 = arith.maximumf %7, %8 : vector<8x128xf32>
    %c1 = arith.constant 1 : index
    %c0_8 = arith.constant 0 : index
    %c0_9 = arith.constant 0 : index
    %10 = vector.load %arg2[%c1, %c0_8, %c0_9] : memref<3x128x128xf32, #tpu.memory_space<vmem>>, vector<1x128x128xf32>
    %11 = vector.shape_cast %10 : vector<1x128x128xf32> to vector<128x128xf32>
    %cst_10 = arith.constant dense<0.000000e+00> : vector<8x128xf32>
    %12 = tpu.matmul %9, %11, %cst_10 {dimension_numbers = #tpu.dot_dimension_numbers<[1], [0], [0], [1], [0, 0, 1, 1], [], []>} : vector<8x128xf32>, vector<128x128xf32>, vector<8x128xf32> -> vector<8x128xf32>
    %c1_11 = arith.constant 1 : index
    %c0_12 = arith.constant 0 : index
    %c0_13 = arith.constant 0 : index
    %13 = vector.load %arg3[%c1_11, %c0_12, %c0_13] : memref<3x1x128xf32, #tpu.memory_space<vmem>>, vector<1x1x128xf32>
    %14 = vector.shape_cast %13 : vector<1x1x128xf32> to vector<1x128xf32>
    %15 = vector.broadcast %14 : vector<1x128xf32> to vector<8x128xf32>
    %16 = arith.addf %12, %15 : vector<8x128xf32>
    %cst_14 = arith.constant 0.000000e+00 : f32
    %17 = vector.broadcast %cst_14 : f32 to vector<8x128xf32>
    %18 = arith.maximumf %16, %17 : vector<8x128xf32>
    %c2 = arith.constant 2 : index
    %c0_15 = arith.constant 0 : index
    %c0_16 = arith.constant 0 : index
    %19 = vector.load %arg2[%c2, %c0_15, %c0_16] : memref<3x128x128xf32, #tpu.memory_space<vmem>>, vector<1x128x128xf32>
    %20 = vector.shape_cast %19 : vector<1x128x128xf32> to vector<128x128xf32>
    %cst_17 = arith.constant dense<0.000000e+00> : vector<8x128xf32>
    %21 = tpu.matmul %18, %20, %cst_17 {dimension_numbers = #tpu.dot_dimension_numbers<[1], [0], [0], [1], [0, 0, 1, 1], [], []>} : vector<8x128xf32>, vector<128x128xf32>, vector<8x128xf32> -> vector<8x128xf32>
    %c2_18 = arith.constant 2 : index
    %c0_19 = arith.constant 0 : index
    %c0_20 = arith.constant 0 : index
    %22 = vector.load %arg3[%c2_18, %c0_19, %c0_20] : memref<3x1x128xf32, #tpu.memory_space<vmem>>, vector<1x1x128xf32>
    %23 = vector.shape_cast %22 : vector<1x1x128xf32> to vector<1x128xf32>
    %24 = vector.broadcast %23 : vector<1x128xf32> to vector<8x128xf32>
    %25 = arith.addf %21, %24 : vector<8x128xf32>
    %cst_21 = arith.constant 0.000000e+00 : f32
    %26 = vector.broadcast %cst_21 : f32 to vector<8x128xf32>
    %27 = arith.maximumf %25, %26 : vector<8x128xf32>
    %c0_22 = arith.constant 0 : index
    %c0_23 = arith.constant 0 : index
    %28 = vector.load %arg4[%c0_22, %c0_23] : memref<8x128xf32, #tpu.memory_space<vmem>>, vector<8x128xf32>
    tpu.vector_store %arg4[%c0_22, %c0_23], %27 {strides = array<i32>} : memref<8x128xf32, #tpu.memory_space<vmem>>, vector<8x128xf32>,
    return
  }
  func.func @transform_0(%arg0: i32) -> (i32, i32) {
    %c0_i32 = arith.constant 0 : i32
    %c0_i32_0 = arith.constant 0 : i32
    return %arg0, %c0_i32 : i32, i32
  }
  func.func @transform_1(%arg0: i32) -> (i32, i32, i32) {
    %c0_i32 = arith.constant 0 : i32
    %c0_i32_0 = arith.constant 0 : i32
    %c0_i32_1 = arith.constant 0 : i32
    %c0_i32_2 = arith.constant 0 : i32
    return %c0_i32, %c0_i32_0, %c0_i32_1 : i32, i32, i32
  }
  func.func @transform_2(%arg0: i32) -> (i32, i32, i32) {
    %c0_i32 = arith.constant 0 : i32
    %c0_i32_0 = arith.constant 0 : i32
    %c0_i32_1 = arith.constant 0 : i32
    %c0_i32_2 = arith.constant 0 : i32
    return %c0_i32, %c0_i32_0, %c0_i32_1 : i32, i32, i32
  }
  func.func @transform_3(%arg0: i32) -> (i32, i32) {
    %c0_i32 = arith.constant 0 : i32
    %c0_i32_0 = arith.constant 0 : i32
    return %arg0, %c0_i32 : i32, i32
  }
}

</mosaic_0001>

<bundles_post_ra>
// kernel: mlp_forward.1
= control target key start
LH: loop header
LB: loop body
LE: loop exit
PB: predicated region body
PF: predicated region fallthrough
CT: control target
= control target key end

     0   :  { %v610_v3 = vmov 0.0|0.0   ;;  %vm611_vm0 = vmmov 0   ;;  %v612_v6 = vmov 0.0   ;;  %s832_s0 = inlined_call_operand.vmem [shape: f32[8,128], index: 0, kind: input, shape index: {}]   ;;  %s833_s1 = inlined_call_operand.vmem [shape: f32[3,128,128], index: 1, kind: input, shape index: {}]   ;;  %s834_s2 = inlined_call_operand.vmem [shape: f32[3,1,128], index: 2, kind: input, shape index: {}]   ;;  %s835_s3 = inlined_call_operand.hbm [shape: f32[8,128], index: 3, kind: output, shape index: {}]  }
   0x1   :  { %v16_v0 = vld [vmem:[%s833_s1] sm:$0xff]  ;;  %v17_v1 = vld [vmem:[%s833_s1 + $0x8] sm:$0xff]  ;;  %v18_v2 = vld [vmem:[%s833_s1 + $0x10] sm:$0xff]  ;;  %510 = vmatprep.subr.bf16.mxu0 %v610_v3  ;;  %437 = vmatprep.mubr.msk.f32.mxu0 %vm611_vm0, %v612_v6 }
   0x2   :  { %v511_v4 = vpack.c.bf16 %v17_v1, %v16_v0  ;;  %v19_v5 = vld [vmem:[%s833_s1 + $0x18] sm:$0xff]  ;;  %534 = vmatprep.subr.bf16.mxu1 %v610_v3  ;;  %472 = vmatprep.mubr.msk.f32.mxu1 %vm611_vm0, %v612_v6  ;;  %v20_v8 = vld [vmem:[%s833_s1 + $0x20] sm:$0xff]  ;;  %v21_v9 = vld [vmem:[%s833_s1 + $0x28] sm:$0xff] }
   0x3   :  { %v514_v7 = vpack.c.bf16 %v19_v5, %v18_v2  ;;  %v318_v10 = vld [vmem:[%s833_s1 + $0x80] sm:$0xff]  ;;  %v319_v11 = vld [vmem:[%s833_s1 + $0x88] sm:$0xff]  ;;  %v320_v12 = vld [vmem:[%s833_s1 + $0x90] sm:$0xff]  ;;  %v517_v14 = vpack.c.bf16 %v21_v9, %v20_v8 }
   0x4   :  { %512 = vmatpush3.bf16.msra.mxu0 %v511_v4  ;;  %v321_v13 = vld [vmem:[%s833_s1 + $0x98] sm:$0xff]  ;;  %v535_v15 = vpack.c.bf16 %v319_v11, %v318_v10  ;;  %v22_v16 = vld [vmem:[%s833_s1 + $0x30] sm:$0xff]  ;;  %v322_v19 = vld [vmem:[%s833_s1 + $0xa0] sm:$0xff] }
   0x5   :  { %513 = vmatprep.subr.bf16.mxu0 %v610_v3  ;;  %v23_v17 = vld [vmem:[%s833_s1 + $0x38] sm:$0xff]  ;;  %v538_v18 = vpack.c.bf16 %v321_v13, %v320_v12  ;;  %v323_v20 = vld [vmem:[%s833_s1 + $0xa8] sm:$0xff] }
   0x6   :  { %536 = vmatpush3.bf16.msra.mxu1 %v535_v15 }
   0x7   :  { %537 = vmatprep.subr.bf16.mxu1 %v610_v3 }
   0x8   :  { %515 = vmatpush3.bf16.msra.mxu0 %v514_v7 }
   0x9   :  { %516 = vmatprep.subr.bf16.mxu0 %v610_v3 }
   0xa   :  { %8 = vsyncpa [#allocation3], 0  ;;  %v520_v21 = vpack.c.bf16 %v23_v17, %v22_v16  ;;  %v24_v22 = vld [vmem:[%s833_s1 + $0x40] sm:$0xff]  ;;  %v25_v23 = vld [vmem:[%s833_s1 + $0x48] sm:$0xff]  ;;  %539 = vmatpush3.bf16.msra.mxu1 %v538_v18  ;;  %v541_v24 = vpack.c.bf16 %v323_v20, %v322_v19  ;;  %s613_s6 = smov [#allocation2]  }
   0xb   :  { %540 = vmatprep.subr.bf16.mxu1 %v610_v3  ;;  %v324_v25 = vld [vmem:[%s833_s1 + $0xb0] sm:$0xff]  ;;  %v325_v26 = vld [vmem:[%s833_s1 + $0xb8] sm:$0xff]  ;;  %v523_v27 = vpack.c.bf16 %v25_v23, %v24_v22  ;;  %v326_v31 = vld [vmem:[%s833_s1 + $0xc0] sm:$0xff]  ;;  %s309_s7 = sshll.u32 %s613_s6, 4  ;;  %s310_s7 = int_to_ptr.vmem [resolvable:$true] %s309_s7 }
   0xc   :  { %518 = vmatpush3.bf16.msra.mxu0 %v517_v14  ;;  %v26_v28 = vld [vmem:[%s833_s1 + $0x50] sm:$0xff]  ;;  %v27_v29 = vld [vmem:[%s833_s1 + $0x58] sm:$0xff]  ;;  %v544_v30 = vpack.c.bf16 %v325_v26, %v324_v25  ;;  %v327_v32 = vld [vmem:[%s833_s1 + $0xc8] sm:$0xff]  ;;  %p591_p1 = scmp.lt.s32.totalorder %s310_s7, %s310_s7 }
   0xd   :  { %519 = vmatprep.subr.bf16.mxu0 %v610_v3  ;;  %v526_v33 = vpack.c.bf16 %v27_v29, %v26_v28  ;;  %v28_v34 = vld [vmem:[%s833_s1 + $0x60] sm:$0xff]  ;;  %v29_v35 = vld [vmem:[%s833_s1 + $0x68] sm:$0xff]  ;;  %v547_v36 = vpack.c.bf16 %v327_v32, %v326_v31  ;;  %v328_v37 = vld [vmem:[%s833_s1 + $0xd0] sm:$0xff] }
   0xe   :  { %542 = vmatpush3.bf16.msra.mxu1 %v541_v24  ;;  %v329_v38 = vld [vmem:[%s833_s1 + $0xd8] sm:$0xff]  ;;  %v529_v39 = vpack.c.bf16 %v29_v35, %v28_v34  ;;  %v30_v40 = vld [vmem:[%s833_s1 + $0x70] sm:$0xff]  ;;  %v330_v43 = vld [vmem:[%s833_s1 + $0xe0] sm:$0xff] }
   0xf   :  { %543 = vmatprep.subr.bf16.mxu1 %v610_v3  ;;  %v31_v41 = vld [vmem:[%s833_s1 + $0x78] sm:$0xff]  ;;  %v550_v42 = vpack.c.bf16 %v329_v38, %v328_v37  ;;  %v331_v44 = vld [vmem:[%s833_s1 + $0xe8] sm:$0xff]  ;;  %v15_v47 = vld [vmem:[%s832_s0] sm:$0xff] }
  0x10   :  { %521 = vmatpush3.bf16.msra.mxu0 %v520_v21  ;;  %v532_v45 = vpack.c.bf16 %v31_v41, %v30_v40  ;;  %v553_v46 = vpack.c.bf16 %v331_v44, %v330_v43  ;;  %v332_v48 = vld [vmem:[%s833_s1 + $0xf0] sm:$0xff]  ;;  %v333_v49 = vld [vmem:[%s833_s1 + $0xf8] sm:$0xff]  ;;  %v336_v51 = vld [vmem:[%s833_s1 + $0x100] sm:$0xff] }
  0x11   :  { %522 = vmatprep.subr.bf16.mxu0 %v610_v3  ;;  %v556_v50 = vpack.c.bf16 %v333_v49, %v332_v48  ;;  %v337_v52 = vld [vmem:[%s833_s1 + $0x108] sm:$0xff]  ;;  %v338_v53 = vld [vmem:[%s833_s1 + $0x110] sm:$0xff]  ;;  %v339_v55 = vld [vmem:[%s833_s1 + $0x118] sm:$0xff] }
  0x12   :  { %545 = vmatpush3.bf16.msra.mxu1 %v544_v30  ;;  %v559_v54 = vpack.c.bf16 %v337_v52, %v336_v51  ;;  %v562_v56 = vpack.c.bf16 %v339_v55, %v338_v53  ;;  %v340_v57 = vld [vmem:[%s833_s1 + $0x120] sm:$0xff]  ;;  %v341_v58 = vld [vmem:[%s833_s1 + $0x128] sm:$0xff]  ;;  %v342_v60 = vld [vmem:[%s833_s1 + $0x130] sm:$0xff] }
  0x13   :  { %546 = vmatprep.subr.bf16.mxu1 %v610_v3  ;;  %v565_v59 = vpack.c.bf16 %v341_v58, %v340_v57  ;;  %v343_v61 = vld [vmem:[%s833_s1 + $0x138] sm:$0xff]  ;;  %v344_v63 = vld [vmem:[%s833_s1 + $0x140] sm:$0xff]  ;;  %v345_v0 = vld [vmem:[%s833_s1 + $0x148] sm:$0xff] }
  0x14   :  { %524 = vmatpush3.bf16.msra.mxu0 %v523_v27  ;;  %v568_v62 = vpack.c.bf16 %v343_v61, %v342_v60  ;;  %v571_v1 = vpack.c.bf16 %v345_v0, %v344_v63  ;;  %v346_v2 = vld [vmem:[%s833_s1 + $0x150] sm:$0xff]  ;;  %v347_v4 = vld [vmem:[%s833_s1 + $0x158] sm:$0xff]  ;;  %v349_v7 = vld [vmem:[%s833_s1 + $0x168] sm:$0xff] }
  0x15   :  { %525 = vmatprep.subr.bf16.mxu0 %v610_v3  ;;  %v574_v5 = vpack.c.bf16 %v347_v4, %v346_v2  ;;  %v317_v9 = vld [vmem:[%s834_s2] ss:$0 sm:$0xff]  ;;  %v350_v14 = vld [vmem:[%s833_s1 + $0x170] sm:$0xff]  ;;  %v351_v15 = vld [vmem:[%s833_s1 + $0x178] sm:$0xff] }
  0x16   :  { %548 = vmatpush3.bf16.msra.mxu1 %v547_v36  ;;  %v580_v16 = vpack.c.bf16 %v351_v15, %v350_v14  ;;  %v353_v21 = vld [vmem:[%s834_s2 + $0x2] ss:$0 sm:$0xff] }
  0x17   :  { %549 = vmatprep.subr.bf16.mxu1 %v610_v3 }
  0x18   :  { %527 = vmatpush3.bf16.msra.mxu0 %v526_v33 }
  0x19   :  { %528 = vmatprep.subr.bf16.mxu0 %v610_v3 }
  0x1a   :  { %551 = vmatpush3.bf16.msra.mxu1 %v550_v42 }
  0x1b   :  { %552 = vmatprep.subr.bf16.mxu1 %v610_v3 }
  0x1c   :  { %530 = vmatpush3.bf16.msra.mxu0 %v529_v39 }
  0x1d   :  { %531 = vmatprep.subr.bf16.mxu0 %v610_v3 }
  0x1e   :  { %554 = vmatpush3.bf16.msra.mxu1 %v553_v46 }
  0x1f   :  { %555 = vmatprep.subr.bf16.mxu1 %v610_v3 }
  0x20   :  { %533 = vmatpush3.bf16.msra.mxu0 %v532_v45 }
  0x21   :  { %558 = vmatprep.subr.bf16.mxu0 %v610_v3 }
  0x22   :  { %557 = vmatpush3.bf16.msra.mxu1 %v556_v50 }
  0x23   :  { %438 = vmatmul.mubr.f32.vlgmr.msra.gmra.mrb[0].mxu0 %v15_v47 }
  0x24   :  { %507 = vmatprep.mubr.msk.f32.mxu0 %vm611_vm0, %v612_v6  ;;  %560 = vmatpush3.bf16.msra.mxu0 %v559_v54  ;;  %v348_v6 = vld [vmem:[%s833_s1 + $0x160] sm:$0xff]  ;;  %s586_s1 = scalar_lea.vmem %s310_s7, 128 }
  0x25   :  { %561 = vmatprep.subr.bf16.mxu0 %v610_v3  ;;  %v577_v8 = vpack.c.bf16 %v349_v7, %v348_v6  ;;  %p587_p0 = scmp.ne.s32.totalorder %s310_s7, %s586_s1  ;;  %p592_p2 = scmp.lt.s32.totalorder %s586_s1, %s586_s1 }
  0x27   :  { %p593_p3 = por %p592_p2, %p591_p1 }
  0x28   :  { %563 = vmatpush3.bf16.msra.mxu0 %v562_v56 }
  0x29   :  { %564 = vmatprep.subr.bf16.mxu0 %v610_v3  ;;  %p594_p4 = pnand %p593_p3, %p587_p0 }
  0x2c   :  { %566 = vmatpush3.bf16.msra.mxu0 %v565_v59 }
  0x2d   :  { %567 = vmatprep.subr.bf16.mxu0 %v610_v3 }
  0x30   :  { %569 = vmatpush3.bf16.msra.mxu0 %v568_v62 }
  0x31   :  { %570 = vmatprep.subr.bf16.mxu0 %v610_v3 }
  0x34   :  { %572 = vmatpush3.bf16.msra.mxu0 %v571_v1 }
  0x35   :  { %573 = vmatprep.subr.bf16.mxu0 %v610_v3 }
  0x38   :  { %575 = vmatpush3.bf16.msra.mxu0 %v574_v5 }
  0x39   :  { %576 = vmatprep.subr.bf16.mxu0 %v610_v3 }
  0x3c   :  { %578 = vmatpush3.bf16.msra.mxu0 %v577_v8 }
  0x3d   :  { %579 = vmatprep.subr.bf16.mxu0 %v610_v3  ;;  %v335_v3 = vld [vmem:[%s834_s2 + $0x1] ss:$0 sm:$0xff] }
  0x40   :  { %581 = vmatpush3.bf16.msra.mxu0 %v580_v16 }
  0xf6   :  { %v105_v10 = vpop.f32.mrb[0].mxu0 }
  0xf7   :  { %v106_v11 = vadd.f32 %v317_v9, %v105_v10  ;;  %v439_v12 = vpop.f32.mrb[1].mxu0 }
  0xf9   :  { %v109_v13 = vmax.f32 %v106_v11, 0.0 }
  0xfb   :  { %473 = vmatmul.mubr.f32.vlgmr.msra.gmra.mrb[0].mxu1 %v109_v13 }
 0x1ce   :  { %v201_v17 = vpop.f32.mrb[0].mxu1 }
 0x1cf   :  { %v202_v18 = vadd.f32 %v335_v3, %v201_v17  ;;  %v474_v19 = vpop.f32.mrb[1].mxu1 }
 0x1d1   :  { %v205_v20 = vmax.f32 %v202_v18, 0.0 }
 0x1d3   :  { %508 = vmatmul.mubr.f32.vlgmr.msra.gmra.mrb[2].mxu0 %v205_v20 }
 0x2a6   :  { %v297_v22 = vpop.f32.mrb[2].mxu0 }
 0x2a7   :  { %v298_v23 = vadd.f32 %v353_v21, %v297_v22  ;;  %v509_v24 = vpop.f32.mrb[3].mxu0 }
 0x2a9   :  { %v301_v25 = vmax.f32 %v298_v23, 0.0 }
 0x2ab   :  { %302 = vst [vmem:[#allocation2] sm:$0xff] %v301_v25 }
 0x2ac   :  { %597 = shalt.err (!%p594_p4)
}
 0x2ad   :  { %s598_s10 = scalar_lea.hbm %s835_s3, 128 }
 0x2ae   :  { %p599_p5 = scmp.ne.s32.totalorder %s835_s3, %s598_s10  ;;  %p602_p6 = scmp.lt.u32.totalorder %s598_s10, %s835_s3 }
 0x2b0   :  { %p604_p7 = pnand %p602_p6, %p599_p5 }
 0x2b2   :  { %607 = shalt.err (!%p604_p7)
}
 0x2b3   :  { %312 = dma.vmem_to_hbm [thread:$0]  %s310_s7, 128, %s835_s3, [#allocation3]  }
 0x2b4   :  { %608 = dma.done.wait [#allocation3], 128  }
 0x2b5   :  { %609 = vsyncadd [#allocation3], 4294967168 }
 0x2b6   :  { %316 = vsyncpa [#allocation3], 1 }

</bundles_post_ra>
